<compile_context>
chip_gen: v7x
topology: tpu7x:2x2x1
jax: 0.10.0
libtpu: 0.0.40
codegen_flags: <defaults>
</compile_context>

<pallas_src>
import functools

import jax
import jax.numpy as jnp
from jax.experimental import pallas as pl
from jax.experimental.pallas import tpu as pltpu


# ---------------------------------------------------------------------------
# Kernel 1: conv1/conv2/conv3 (BN folded, ReLU) + MaxPool1d over points.
# ---------------------------------------------------------------------------
def conv_pool_kernel(x_ref, w1_ref, b1_ref, w2_ref, b2_ref, w3_ref, b3_ref,
                     pooled_ref, acc_ref, *, k, epi_dtype):
    f32 = jnp.float32
    bf16 = jnp.bfloat16
    p = pl.program_id(1)

    # Reset the per-batch running partial-max accumulator on the first tile.
    @pl.when(p == 0)
    def _init():
        acc_ref[...] = jnp.full_like(acc_ref, -jnp.inf)

    x = x_ref[...]                                    # (TILE_P, k)   f32
    w1 = w1_ref[...]                                  # (k, 64)       f32

    # conv1: K=k (tiny) contraction on the VPU as k broadcast FMAs, keeping
    # the MXU free for conv2/conv3.
    h = x[:, 0:1] * w1[0:1, :]
    for i in range(1, k):
        h = h + x[:, i:i + 1] * w1[i:i + 1, :]
    h = jnp.maximum(h + b1_ref[...], 0.0)             # (TILE_P, 64)  f32

    # conv2 / conv3: bf16 MXU matmuls with f32 accumulation.  Epilogue
    # (bias + ReLU) and the max accumulator run in `epi_dtype` (bf16 on
    # chips with a bf16 VPU, f32 on v5e).
    h = jnp.dot(h.astype(bf16), w2_ref[...], preferred_element_type=f32)
    h = jnp.maximum(h.astype(epi_dtype) + b2_ref[...].astype(epi_dtype), 0.0)  # (TILE_P, 128)
    h = jnp.dot(h.astype(bf16), w3_ref[...], preferred_element_type=f32)
    h = jnp.maximum(h.astype(epi_dtype) + b3_ref[...].astype(epi_dtype), 0.0)  # (TILE_P, 1024)

    # Running MaxPool1d over points: keep an (8, 1024) partial max (pure VPU
    # elementwise maxes); the cross-sublane 8->1 reduce happens only once per
    # batch in the finalize step.
    acc_ref[...] = jnp.maximum(acc_ref[...],
                               jnp.max(h.reshape(-1, 8, h.shape[-1]), axis=0))

    @pl.when(p == pl.num_programs(1) - 1)
    def _finalize():
        pooled_ref[...] = jnp.max(acc_ref[...], axis=0, keepdims=True).astype(f32)


# ---------------------------------------------------------------------------
# Kernel 2: FC head (fc1/fc2 with folded BN + ReLU, fc3, identity add),
# batched over B, all in f32 (accuracy; cost negligible).
# ---------------------------------------------------------------------------
def fc_head_kernel(pooled_ref, eye_ref, wf1_ref, bf1_ref, wf2_ref, bf2_ref,
                   wf3_ref, bf3_ref, out_ref):
    f32 = jnp.float32
    f = jnp.maximum(jnp.dot(pooled_ref[...], wf1_ref[...],
                            preferred_element_type=f32) + bf1_ref[...], 0.0)
    f = jnp.maximum(jnp.dot(f, wf2_ref[...],
                            preferred_element_type=f32) + bf2_ref[...], 0.0)
    out_ref[...] = (jnp.dot(f, wf3_ref[...], preferred_element_type=f32)
                    + bf3_ref[...] + eye_ref[...])


# ---------------------------------------------------------------------------
# Parameter folding (inference-mode BatchNorm folded into weights/biases).
# ---------------------------------------------------------------------------
def fold_bn(w, b, gamma, beta, mean, var, eps=1e-5, w_dtype=jnp.bfloat16):
    """Fold BN into a (C_out, C_in) weight + bias.  Returns W^T (C_in, C_out)
    cast to `w_dtype` and bias as (1, C_out) f32 so the kernel does x @ W + b."""
    s = gamma / jnp.sqrt(var + eps)
    w_f = (w * s[:, None]).T
    b_f = (b - mean) * s + beta
    return w_f.astype(w_dtype), b_f.reshape(1, -1).astype(jnp.float32)


def fold_params(raw):
    conv = []
    conv += fold_bn(*raw["conv1"], w_dtype=jnp.float32)   # conv1 stays f32 (VPU path)
    conv += fold_bn(*raw["conv2"])                         # bf16 weights for the MXU
    conv += fold_bn(*raw["conv3"])
    fc = []
    fc += fold_bn(*raw["fc1"], w_dtype=jnp.float32)        # FC head kept in f32
    fc += fold_bn(*raw["fc2"], w_dtype=jnp.float32)
    wf3, bf3 = raw["fc3"]
    fc += [wf3.T.astype(jnp.float32), bf3.reshape(1, -1).astype(jnp.float32)]
    return tuple(conv), tuple(fc)


# ---------------------------------------------------------------------------
# Generation-aware defaults + tile selection.
# ---------------------------------------------------------------------------
def _tpu_defaults():
    try:
        vmem_cap = pltpu.get_tpu_info().vmem_capacity_bytes
    except Exception:
        vmem_cap = 64 << 20
    if vmem_cap >= (100 << 20):          # v5e / v6e: 128 MiB VMEM
        tile_target, vmem_limit = 4096, 80 << 20
    else:                                # v7x: 64 MiB VMEM
        tile_target, vmem_limit = 2048, 48 << 20
    try:
        kind = jax.devices()[0].device_kind.lower()
        use_bf16_epilogue = "v5" not in kind      # v5e has no bf16 VPU
    except Exception:
        use_bf16_epilogue = True
    return tile_target, vmem_limit, use_bf16_epilogue


def _pick_point_tile(n_pts, target):
    """Largest divisor of n_pts that is <= target, preferring multiples of
    256 (full MXU row groups), then 128, then 8."""
    # TODO(synk): point counts that are not a multiple of 8 would need a
    # masked tail tile; standard PointNet sizes satisfy this.
    assert n_pts % 8 == 0, "number of points must be a multiple of 8"
    if n_pts <= target:
        return n_pts
    for align in (256, 128, 8):
        t = (target // align) * align
        while t >= align:
            if n_pts % t == 0:
                return t
            t -= align
    return 8


# ---------------------------------------------------------------------------
# Forward wrapper.
# ---------------------------------------------------------------------------
def tnet_forward(x_ncw, conv_params, fc_params, k,
                 tile_p_target=None, vmem_limit_bytes=None,
                 use_bf16_epilogue=None):
    B, C, N = x_ncw.shape
    assert C == k

    d_tile, d_vmem, d_bf16 = _tpu_defaults()
    tile_p_target = d_tile if tile_p_target is None else tile_p_target
    vmem_limit_bytes = d_vmem if vmem_limit_bytes is None else vmem_limit_bytes
    use_bf16_epilogue = d_bf16 if use_bf16_epilogue is None else use_bf16_epilogue
    epi_dtype = jnp.bfloat16 if use_bf16_epilogue else jnp.float32

    x_bnk = jnp.transpose(x_ncw, (0, 2, 1)).astype(jnp.float32)      # (B, N, k)
    tile_p = _pick_point_tile(N, tile_p_target)
    n_tiles = N // tile_p

    def const_spec(arr):
        # Full-array block, constant index_map -> DMA'd once, stays resident.
        return pl.BlockSpec(arr.shape, lambda b, p, _nd=arr.ndim: (0,) * _nd)

    in_specs = [pl.BlockSpec((None, tile_p, k), lambda b, p: (b, p, 0))]
    in_specs += [const_spec(a) for a in conv_params]

    conv_flops = 2 * B * N * (k * 64 + 64 * 128 + 128 * 1024)
    conv_bytes = int(x_bnk.size * 4
                     + sum(a.size * a.dtype.itemsize for a in conv_params)
                     + B * 1024 * 4)

    # NOTE: the point-tile axis must stay "arbitrary" (sequential, last grid
    # axis); the accumulator reset/finalize logic depends on it.  On v7x the
    # "parallel" batch axis load-balances the 2 TensorCores when B >= 2.
    pooled = pl.pallas_call(
        functools.partial(conv_pool_kernel, k=k, epi_dtype=epi_dtype),
        out_shape=jax.ShapeDtypeStruct((B, 1, 1024), jnp.float32),
        grid_spec=pltpu.PrefetchScalarGridSpec(
            num_scalar_prefetch=0,
            grid=(B, n_tiles),
            in_specs=in_specs,
            out_specs=pl.BlockSpec((None, 1, 1024), lambda b, p: (b, 0, 0)),
            scratch_shapes=[pltpu.VMEM((8, 1024), epi_dtype)],
        ),
        compiler_params=pltpu.CompilerParams(
            dimension_semantics=("parallel", "arbitrary"),
            vmem_limit_bytes=vmem_limit_bytes,
        ),
        cost_estimate=pl.CostEstimate(flops=conv_flops, transcendentals=0,
                                      bytes_accessed=conv_bytes),
    )(x_bnk, *conv_params)
    pooled = pooled.reshape(B, 1024)

    # FC head, batched over B in a single grid step (whole arrays in VMEM).
    eye_flat = jnp.eye(k, dtype=jnp.float32).reshape(1, k * k)
    fc_args = (pooled, eye_flat) + tuple(fc_params)

    def fc_spec(arr):
        return pl.BlockSpec(arr.shape, lambda i, _nd=arr.ndim: (0,) * _nd)

    fc_flops = 2 * B * (1024 * 512 + 512 * 256 + 256 * k * k)
    fc_bytes = int(sum(a.size * a.dtype.itemsize for a in fc_args)
                   + B * k * k * 4)

    out = pl.pallas_call(
        fc_head_kernel,
        out_shape=jax.ShapeDtypeStruct((B, k * k), jnp.float32),
        grid_spec=pltpu.PrefetchScalarGridSpec(
            num_scalar_prefetch=0,
            grid=(1,),
            in_specs=[fc_spec(a) for a in fc_args],
            out_specs=pl.BlockSpec((B, k * k), lambda i: (0, 0)),
        ),
        compiler_params=pltpu.CompilerParams(
            dimension_semantics=("arbitrary",),
        ),
        cost_estimate=pl.CostEstimate(flops=fc_flops, transcendentals=0,
                                      bytes_accessed=fc_bytes),
    )(*fc_args)

    return out.reshape(B, k, k)


# ---------------------------------------------------------------------------
# Pure-JAX reference mirroring the PyTorch module (BatchNorm in eval mode).
# ---------------------------------------------------------------------------
def ref_forward(x_ncw, raw, k, eps=1e-5):
    def bn(z, gamma, beta, mean, var):
        if z.ndim == 3:
            g, be = gamma[None, :, None], beta[None, :, None]
            m, v = mean[None, :, None], var[None, :, None]
        else:
            g, be, m, v = gamma[None, :], beta[None, :], mean[None, :], var[None, :]
        return (z - m) / jnp.sqrt(v + eps) * g + be

    x = x_ncw
    for name in ("conv1", "conv2", "conv3"):
        w, b, gamma, beta, mean, var = raw[name]
        x = jnp.einsum("oc,bcn->bon", w, x) + b[None, :, None]
        x = jnp.maximum(bn(x, gamma, beta, mean, var), 0.0)
    pooled = jnp.max(x, axis=-1)                      # MaxPool1d(N) + Flatten
    f = pooled
    for name in ("fc1", "fc2"):
        w, b, gamma, beta, mean, var = raw[name]
        f = f @ w.T + b
        f = jnp.maximum(bn(f, gamma, beta, mean, var), 0.0)
    w, b = raw["fc3"]
    out = f @ w.T + b
    return out.reshape(-1, k, k) + jnp.eye(k, dtype=out.dtype)[None]


if __name__ == "__main__":
    k = 3
    B = 2
    N = 16  # number of points (small demo; real PointNet uses 1024-2500)

    key = jax.random.PRNGKey(0)
    keys = iter(jax.random.split(key, 64))

    def nrm(shape, scale=0.1):
        return (scale * jax.random.normal(next(keys), shape)).astype(jnp.float32)

    def make_bn(c):
        gamma = (1.0 + 0.1 * jax.random.normal(next(keys), (c,))).astype(jnp.float32)
        beta = (0.1 * jax.random.normal(next(keys), (c,))).astype(jnp.float32)
        mean = (0.05 * jax.random.normal(next(keys), (c,))).astype(jnp.float32)
        var = (1.0 + 0.1 * jax.random.uniform(next(keys), (c,))).astype(jnp.float32)
        return gamma, beta, mean, var

    # Raw parameters with the same shapes as the PyTorch module.
    raw = {
        "conv1": (nrm((64, k)), nrm((64,))) + make_bn(64),
        "conv2": (nrm((128, 64)), nrm((128,))) + make_bn(128),
        "conv3": (nrm((1024, 128)), nrm((1024,))) + make_bn(1024),
        "fc1": (nrm((512, 1024)), nrm((512,))) + make_bn(512),
        "fc2": (nrm((256, 512)), nrm((256,))) + make_bn(256),
        "fc3": (nrm((k * k, 256)), nrm((k * k,))),
    }

    # TODO(synk): BatchNorm is implemented in inference mode (running stats),
    # not training-mode batch statistics; .cuda() placement is a no-op here.
    conv_params, fc_params = fold_params(raw)

    # Example input: (B, k, N) like the PyTorch NCW Conv1d input.
    x = jax.random.normal(next(keys), (B, k, N), dtype=jnp.float32)

    ref = ref_forward(x, raw, k)

    # Exercise: multi-tile accumulation (f32 and bf16 epilogue paths) and the
    # device-default tile / epilogue selection.
    configs = (
        dict(tile_p_target=8, use_bf16_epilogue=False),
        dict(tile_p_target=8, use_bf16_epilogue=True),
        dict(),
    )
    for cfg in configs:
        out = jax.block_until_ready(tnet_forward(x, conv_params, fc_params, k, **cfg))
        assert out.shape == (B, k, k), out.shape
        err = float(jnp.max(jnp.abs(out - ref)))
        # bf16 conv matmuls with f32 accumulation -> slightly loose tolerance.
        assert jnp.allclose(out, ref, rtol=2e-2, atol=2e-2), ("mismatch", cfg, err)

    print("KERNEL_OK")
</pallas_src>

<mosaic_0001>
module attributes {stable_mosaic.version = 11 : i64} {
  func.func @conv_pool_kernel(%arg0: i32, %arg1: i32, %arg2: memref<1x8x3xf32, #tpu.memory_space<vmem>>, %arg3: memref<3x64xf32, #tpu.memory_space<vmem>>, %arg4: memref<1x64xf32, #tpu.memory_space<vmem>>, %arg5: memref<64x128xbf16, #tpu.memory_space<vmem>>, %arg6: memref<1x128xf32, #tpu.memory_space<vmem>>, %arg7: memref<128x1024xbf16, #tpu.memory_space<vmem>>, %arg8: memref<1x1024xf32, #tpu.memory_space<vmem>>, %arg9: memref<1x1x1024xf32, #tpu.memory_space<vmem>>, %arg10: memref<8x1024xf32, #tpu.memory_space<vmem>>) attributes {dimension_semantics = [#tpu.dimension_semantics<parallel>, #tpu.dimension_semantics<arbitrary>], iteration_bounds = array<i64: 2, 2>, scalar_prefetch = 0 : i64, scratch_operands = 1 : i64, tpu.core_type = #tpu.core_type<tc>, window_params = [{transform_indices = @transform_0, window_bounds = array<i64: 1, 8, 3>}, {pipeline_mode = #tpu.pipeline_mode<synchronous>, transform_indices = @transform_1, window_bounds = array<i64: 3, 64>}, {pipeline_mode = #tpu.pipeline_mode<synchronous>, transform_indices = @transform_2, window_bounds = array<i64: 1, 64>}, {pipeline_mode = #tpu.pipeline_mode<synchronous>, transform_indices = @transform_3, window_bounds = array<i64: 64, 128>}, {pipeline_mode = #tpu.pipeline_mode<synchronous>, transform_indices = @transform_4, window_bounds = array<i64: 1, 128>}, {pipeline_mode = #tpu.pipeline_mode<synchronous>, transform_indices = @transform_5, window_bounds = array<i64: 128, 1024>}, {pipeline_mode = #tpu.pipeline_mode<synchronous>, transform_indices = @transform_6, window_bounds = array<i64: 1, 1024>}, {transform_indices = @transform_7, window_bounds = array<i64: 1, 1, 1024>}]} {
    %c0_i32 = arith.constant 0 : i32
    %0 = arith.cmpi eq, %arg1, %c0_i32 : i32
    %1 = arith.extui %0 : i1 to i32
    %c0_i32_0 = arith.constant 0 : i32
    %2 = arith.cmpi ne, %1, %c0_i32_0 : i32
    scf.if %2 {
      %cst_25 = arith.constant 0xFF800000 : f32
      %52 = vector.broadcast %cst_25 : f32 to vector<8x1024xf32>
      %c0_26 = arith.constant 0 : index
      %c0_27 = arith.constant 0 : index
      %53 = vector.load %arg10[%c0_26, %c0_27] : memref<8x1024xf32, #tpu.memory_space<vmem>>, vector<8x1024xf32>
      tpu.vector_store %arg10[%c0_26, %c0_27], %52 {strides = array<i32>} : memref<8x1024xf32, #tpu.memory_space<vmem>>, vector<8x1024xf32>,
    } else {
    }
    %c0 = arith.constant 0 : index
    %c0_1 = arith.constant 0 : index
    %c0_2 = arith.constant 0 : index
    %3 = vector.load %arg2[%c0, %c0_1, %c0_2] : memref<1x8x3xf32, #tpu.memory_space<vmem>>, vector<1x8x3xf32>
    %4 = vector.shape_cast %3 : vector<1x8x3xf32> to vector<8x3xf32>
    %c0_3 = arith.constant 0 : index
    %c0_4 = arith.constant 0 : index
    %5 = vector.load %arg3[%c0_3, %c0_4] : memref<3x64xf32, #tpu.memory_space<vmem>>, vector<3x64xf32>
    %6 = vector.extract_strided_slice %4 {offsets = [0, 0], sizes = [8, 1], strides = [1, 1]} : vector<8x3xf32> to vector<8x1xf32>
    %7 = vector.extract_strided_slice %5 {offsets = [0, 0], sizes = [1, 64], strides = [1, 1]} : vector<3x64xf32> to vector<1x64xf32>
    %8 = vector.broadcast %6 : vector<8x1xf32> to vector<8x64xf32>
    %9 = vector.broadcast %7 : vector<1x64xf32> to vector<8x64xf32>
    %10 = arith.mulf %8, %9 : vector<8x64xf32>
    %11 = vector.extract_strided_slice %4 {offsets = [0, 1], sizes = [8, 1], strides = [1, 1]} : vector<8x3xf32> to vector<8x1xf32>
    %12 = vector.extract_strided_slice %5 {offsets = [1, 0], sizes = [1, 64], strides = [1, 1]} : vector<3x64xf32> to vector<1x64xf32>
    %13 = vector.broadcast %11 : vector<8x1xf32> to vector<8x64xf32>
    %14 = vector.broadcast %12 : vector<1x64xf32> to vector<8x64xf32>
    %15 = arith.mulf %13, %14 : vector<8x64xf32>
    %16 = arith.addf %10, %15 : vector<8x64xf32>
    %17 = vector.extract_strided_slice %4 {offsets = [0, 2], sizes = [8, 1], strides = [1, 1]} : vector<8x3xf32> to vector<8x1xf32>
    %18 = vector.extract_strided_slice %5 {offsets = [2, 0], sizes = [1, 64], strides = [1, 1]} : vector<3x64xf32> to vector<1x64xf32>
    %19 = vector.broadcast %17 : vector<8x1xf32> to vector<8x64xf32>
    %20 = vector.broadcast %18 : vector<1x64xf32> to vector<8x64xf32>
    %21 = arith.mulf %19, %20 : vector<8x64xf32>
    %22 = arith.addf %16, %21 : vector<8x64xf32>
    %c0_5 = arith.constant 0 : index
    %c0_6 = arith.constant 0 : index
    %23 = vector.load %arg4[%c0_5, %c0_6] : memref<1x64xf32, #tpu.memory_space<vmem>>, vector<1x64xf32>
    %24 = vector.broadcast %23 : vector<1x64xf32> to vector<8x64xf32>
    %25 = arith.addf %22, %24 : vector<8x64xf32>
    %cst = arith.constant 0.000000e+00 : f32
    %26 = vector.broadcast %cst : f32 to vector<8x64xf32>
    %27 = arith.maximumf %25, %26 : vector<8x64xf32>
    %28 = arith.truncf %27 : vector<8x64xf32> to vector<8x64xbf16>
    %c0_7 = arith.constant 0 : index
    %c0_8 = arith.constant 0 : index
    %29 = vector.load %arg5[%c0_7, %c0_8] : memref<64x128xbf16, #tpu.memory_space<vmem>>, vector<64x128xbf16>
    %cst_9 = arith.constant dense<0.000000e+00> : vector<8x128xf32>
    %30 = tpu.matmul %28, %29, %cst_9 {dimension_numbers = #tpu.dot_dimension_numbers<[1], [0], [0], [1], [0, 0, 1, 1], [], []>} : vector<8x64xbf16>, vector<64x128xbf16>, vector<8x128xf32> -> vector<8x128xf32>
    %c0_10 = arith.constant 0 : index
    %c0_11 = arith.constant 0 : index
    %31 = vector.load %arg6[%c0_10, %c0_11] : memref<1x128xf32, #tpu.memory_space<vmem>>, vector<1x128xf32>
    %32 = vector.broadcast %31 : vector<1x128xf32> to vector<8x128xf32>
    %33 = arith.addf %30, %32 : vector<8x128xf32>
    %cst_12 = arith.constant 0.000000e+00 : f32
    %34 = vector.broadcast %cst_12 : f32 to vector<8x128xf32>
    %35 = arith.maximumf %33, %34 : vector<8x128xf32>
    %36 = arith.truncf %35 : vector<8x128xf32> to vector<8x128xbf16>
    %c0_13 = arith.constant 0 : index
    %c0_14 = arith.constant 0 : index
    %37 = vector.load %arg7[%c0_13, %c0_14] : memref<128x1024xbf16, #tpu.memory_space<vmem>>, vector<128x1024xbf16>
    %cst_15 = arith.constant dense<0.000000e+00> : vector<8x1024xf32>
    %38 = tpu.matmul %36, %37, %cst_15 {dimension_numbers = #tpu.dot_dimension_numbers<[1], [0], [0], [1], [0, 0, 1, 1], [], []>} : vector<8x128xbf16>, vector<128x1024xbf16>, vector<8x1024xf32> -> vector<8x1024xf32>
    %c0_16 = arith.constant 0 : index
    %c0_17 = arith.constant 0 : index
    %39 = vector.load %arg8[%c0_16, %c0_17] : memref<1x1024xf32, #tpu.memory_space<vmem>>, vector<1x1024xf32>
    %40 = vector.broadcast %39 : vector<1x1024xf32> to vector<8x1024xf32>
    %41 = arith.addf %38, %40 : vector<8x1024xf32>
    %cst_18 = arith.constant 0.000000e+00 : f32
    %42 = vector.broadcast %cst_18 : f32 to vector<8x1024xf32>
    %43 = arith.maximumf %41, %42 : vector<8x1024xf32>
    %c0_19 = arith.constant 0 : index
    %c0_20 = arith.constant 0 : index
    %44 = vector.load %arg10[%c0_19, %c0_20] : memref<8x1024xf32, #tpu.memory_space<vmem>>, vector<8x1024xf32>
    %45 = vector.shape_cast %43 : vector<8x1024xf32> to vector<1x8x1024xf32>
    %cst_21 = arith.constant dense<0xFF800000> : vector<8x1024xf32>
    %46 = vector.multi_reduction <maximumf>, %45, %cst_21 [0] : vector<1x8x1024xf32> to vector<8x1024xf32>
    %47 = arith.maximumf %44, %46 : vector<8x1024xf32>
    %c0_22 = arith.constant 0 : index
    %c0_23 = arith.constant 0 : index
    %48 = vector.load %arg10[%c0_22, %c0_23] : memref<8x1024xf32, #tpu.memory_space<vmem>>, vector<8x1024xf32>
    tpu.vector_store %arg10[%c0_22, %c0_23], %47 {strides = array<i32>} : memref<8x1024xf32, #tpu.memory_space<vmem>>, vector<8x1024xf32>,
    %c1_i32 = arith.constant 1 : i32
    %49 = arith.cmpi eq, %arg1, %c1_i32 : i32
    %50 = arith.extui %49 : i1 to i32
    %c0_i32_24 = arith.constant 0 : i32
    %51 = arith.cmpi ne, %50, %c0_i32_24 : i32
    scf.if %51 {
      %c0_25 = arith.constant 0 : index
      %c0_26 = arith.constant 0 : index
      %52 = vector.load %arg10[%c0_25, %c0_26] : memref<8x1024xf32, #tpu.memory_space<vmem>>, vector<8x1024xf32>
      %cst_27 = arith.constant dense<0xFF800000> : vector<1024xf32>
      %53 = vector.multi_reduction <maximumf>, %52, %cst_27 [0] : vector<8x1024xf32> to vector<1024xf32>
      %54 = vector.shape_cast %53 : vector<1024xf32> to vector<1x1024xf32>
      %c0_28 = arith.constant 0 : index
      %c0_29 = arith.constant 0 : index
      %c0_30 = arith.constant 0 : index
      %55 = vector.load %arg9[%c0_28, %c0_29, %c0_30] : memref<1x1x1024xf32, #tpu.memory_space<vmem>>, vector<1x1x1024xf32>
      %56 = vector.shape_cast %55 : vector<1x1x1024xf32> to vector<1x1024xf32>
      %57 = vector.shape_cast %54 : vector<1x1024xf32> to vector<1x1x1024xf32>
      tpu.vector_store %arg9[%c0_28, %c0_29, %c0_30], %57 {strides = array<i32>} : memref<1x1x1024xf32, #tpu.memory_space<vmem>>, vector<1x1x1024xf32>,
    } else {
    }
    return
  }
  func.func @transform_0(%arg0: i32, %arg1: i32) -> (i32, i32, i32) {
    %c0_i32 = arith.constant 0 : i32
    %c0_i32_0 = arith.constant 0 : i32
    return %arg0, %arg1, %c0_i32 : i32, i32, i32
  }
  func.func @transform_1(%arg0: i32, %arg1: i32) -> (i32, i32) {
    %c0_i32 = arith.constant 0 : i32
    %c0_i32_0 = arith.constant 0 : i32
    %c0_i32_1 = arith.constant 0 : i32
    return %c0_i32, %c0_i32_0 : i32, i32
  }
  func.func @transform_2(%arg0: i32, %arg1: i32) -> (i32, i32) {
    %c0_i32 = arith.constant 0 : i32
    %c0_i32_0 = arith.constant 0 : i32
    %c0_i32_1 = arith.constant 0 : i32
    return %c0_i32, %c0_i32_0 : i32, i32
  }
  func.func @transform_3(%arg0: i32, %arg1: i32) -> (i32, i32) {
    %c0_i32 = arith.constant 0 : i32
    %c0_i32_0 = arith.constant 0 : i32
    %c0_i32_1 = arith.constant 0 : i32
    return %c0_i32, %c0_i32_0 : i32, i32
  }
  func.func @transform_4(%arg0: i32, %arg1: i32) -> (i32, i32) {
    %c0_i32 = arith.constant 0 : i32
    %c0_i32_0 = arith.constant 0 : i32
    %c0_i32_1 = arith.constant 0 : i32
    return %c0_i32, %c0_i32_0 : i32, i32
  }
  func.func @transform_5(%arg0: i32, %arg1: i32) -> (i32, i32) {
    %c0_i32 = arith.constant 0 : i32
    %c0_i32_0 = arith.constant 0 : i32
    %c0_i32_1 = arith.constant 0 : i32
    return %c0_i32, %c0_i32_0 : i32, i32
  }
  func.func @transform_6(%arg0: i32, %arg1: i32) -> (i32, i32) {
    %c0_i32 = arith.constant 0 : i32
    %c0_i32_0 = arith.constant 0 : i32
    %c0_i32_1 = arith.constant 0 : i32
    return %c0_i32, %c0_i32_0 : i32, i32
  }
  func.func @transform_7(%arg0: i32, %arg1: i32) -> (i32, i32, i32) {
    %c0_i32 = arith.constant 0 : i32
    %c0_i32_0 = arith.constant 0 : i32
    %c0_i32_1 = arith.constant 0 : i32
    return %arg0, %c0_i32, %c0_i32_0 : i32, i32, i32
  }
}

</mosaic_0001>

<bundles_post_ra>
// kernel: tpu_custom_call.1
= control target key start
LH: loop header
LB: loop body
LE: loop exit
PB: predicated region body
PF: predicated region fallthrough
CT: control target
= control target key end

     0   :  { %12 = vsyncpa [#allocation4], 0  ;;  %s1931_s0 = inlined_call_operand.vmem [shape: f32[2,16,3], index: 0, kind: input, shape index: {}]   ;;  %s1932_s1 = inlined_call_operand.vmem [shape: f32[3,64], index: 1, kind: input, shape index: {}]   ;;  %s1933_s2 = inlined_call_operand.vmem [shape: f32[1,64], index: 2, kind: input, shape index: {}]   ;;  %s1934_s3 = inlined_call_operand.vmem [shape: bf16[64,128], index: 3, kind: input, shape index: {}]   ;;  %s1935_s4 = inlined_call_operand.vmem [shape: f32[1,128], index: 4, kind: input, shape index: {}]   ;;  %s1936_s5 = inlined_call_operand.hbm [shape: bf16[128,1024], index: 5, kind: input, shape index: {}]   ;;  %s1937_s6 = inlined_call_operand.vmem [shape: f32[1,1024], index: 6, kind: input, shape index: {}]   ;;  %s1938_s7 = inlined_call_operand.hbm [shape: f32[2,1,1024], index: 7, kind: output, shape index: {}]  }
   0x1   :  { %13 = vsyncpa [#allocation5], 0 }
   0x2   :  { %15 = vsyncpa [#allocation5 + $0x1], 0  ;;  %s1683_s24 = smov 0   ;;  %s1685_s25 = smov 0  }
   0x3   :  { %s1687_s26 = smov 0   ;;  %s1689_s27 = smov 0  }
   0x4   :  { %s1691_s28 = smov 0   ;;  %s1693_s29 = smov 0  }
   0x5   :  { %s1695_s30 = smov 0   ;;  %s1697_s8 = smov 0  }
   0x6 LB: > { %s1299_s9 = sadd.s32 4294967295, %s1630_s8   ;;  %s1300_s10 = sadd.s32 4294967294, %s1630_s8   ;;  %s1630_s8 = sphi %s1697_s8, %s21_s8   ;;  %s1626_s30 = sphi %s1695_s30, %s1963_s30   ;;  %s1622_s29 = sphi %s1693_s29, %s1962_s29   ;;  %s1618_s28 = sphi %s1691_s28, %s1961_s28   ;;  %s1614_s27 = sphi %s1689_s27, %s1960_s27   ;;  %s1610_s26 = sphi %s1687_s26, %s1959_s26   ;;  %s1606_s25 = sphi %s1685_s25, %s1958_s25   ;;  %s1602_s24 = sphi %s1683_s24, %s1957_s24  }
   0x7   : > { %s30_s11 = sadd.s32 1, %s1622_s29  ;;  %s33_s12 = sadd.s32 1, %s1626_s30 }
   0x8   : > { %p31_p0 = scmp.ge.s32.totalorder %s30_s11, 2  ;;  %s194_s13 = sadd.s32 1, %s1610_s26 }
   0x9   : > { %p204_p1 = scmp.ne.s32.totalorder %s1610_s26, %s1606_s25  ;;  %p205_p2 = scmp.eq.s32.totalorder %s1299_s9, 3 }
   0xa   : > { %s1965_s11 = smov (%p31_p0, %s30_s11), 0  ;;  %s1967_s12 = smov (!%p31_p0, %s33_s12), %s1626_s30 }
   0xb   : > { %1944 = sst [smem:[#allocation9_spill]] %s1965_s11  ;;  %p1733_p3 = por %p205_p2, %p204_p1 }
   0xc   : > { %p210_p4 = scmp.ne.s32.totalorder %s1606_s25, %s1602_s24  ;;  %p35_p5 = scmp.ge.s32.totalorder %s1967_s12, 2 }
   0xd   : > { %s1945_s14 = scalar_select %p1733_p3, 1, 0 }
   0xe   : > { %p211_p6 = scmp.eq.s32.totalorder %s1300_s10, 3  ;;  %p1301_p7 = scmp.ge.s32.totalorder %s1630_s8, 1 }
   0xf   : > { %p218_p8 = scmp.lt.s32.totalorder %s1630_s8, 5  ;;  %s1969_s12 = smov (%p35_p5, %s1967_s12), 0 }
  0x10   : > { %1946 = sst [smem:[#allocation10_spill]] %s1969_s12  ;;  %p1743_p9 = por %p211_p6, %p210_p4 }
  0x11   : > { %p1747_p10 = pnand %p1301_p7, %p218_p8  ;;  %s191_s17 = ssub.s32 %s1626_s30, %s1969_s12 }
  0x12   : > { %s1947_s15 = scalar_select %p1743_p9, 1, 0 }
  0x13   : > { %s1948_s16 = scalar_select %p1747_p10, 1, 0 }
  0x14   : > { %p192_p11 = scmp.eq.s32.totalorder %s191_s17, 0  ;;  %p1411_p12 = pneg %p1747_p10 }
  0x15   : > { %p1755_p13 = scmp.eq.s32.totalorder %s1299_s9, 0  ;;  %s1632_s20 = smov [#allocation3]  }
  0x16   : > { %s1760_s19 = scalar_select %p192_p11, %s1610_s26, %s194_s13  }
  0x17   : > { %s1949_s18 = scalar_select %p1755_p13, 1, 0 }
  0x18   : > { %s242_s21 = sshll.u32 %s1632_s20, 4  ;;  %p1764_p0 = pnand %p1755_p13, %p1411_p12  ;;  %s243_s21 = int_to_ptr.vmem [resolvable:$true] %s242_s21 }
  0x19   : > { %s1504_s17 = scalar_lea.hbm %s1936_s5, 8192 }
  0x1a   : > { %p1505_p1 = scmp.ne.s32.totalorder %s1936_s5, %s1504_s17  ;;  %p1506_p2 = pneg %p1764_p0 }
  0x1b   : > { %p1511_p6 = scmp.lt.u32.totalorder %s1504_s17, %s1936_s5 }
  0x1c   : > { %p1507_p4 = pnand %p1506_p2, %p1505_p1 }
  0x1e   : > { %p1508_p5 = pneg %p1507_p4 }
  0x20   : > { %p1513_p7 = pnand %p1511_p6, %p1508_p5 }
  0x22   : > { %1516 = shalt.err (!%p1513_p7)
}
  0x23   : > { %s1517_s11 = scalar_lea.vmem %s243_s21, 8192  ;;  %p1525_p9 = scmp.lt.s32.totalorder %s243_s21, %s243_s21 }
  0x24   : > { %p1518_p8 = scmp.ne.s32.totalorder %s243_s21, %s1517_s11  ;;  %p1526_p3 = scmp.lt.s32.totalorder %s1517_s11, %s1517_s11 }
  0x26   : > { %p1520_p11 = pnand %p1518_p8, %p1506_p2  ;;  %p1527_p13 = por %p1526_p3, %p1525_p9 }
  0x28   : > { %p1521_p12 = pneg %p1520_p11 }
  0x2a   : > { %p1528_p10 = pnand %p1527_p13, %p1521_p12 }
  0x2c   : > { %1531 = shalt.err (!%p1528_p10)
}
  0x2d   : > { %s1633_s12 = smov 512   ;;  %s1634_s23 = smov 32  }
  0x2e   : > { %1414 = dma.hbm_to_vmem [thread:$0]  (!%p1764_p0), %s1936_s5, 8192, %s243_s21, [#allocation4], %s1633_s12, %s1633_s12, %s1634_s23  }
  0x2f   : > { %p1951_p1 = scmp.ne.s32.totalorder %s1948_s16, 0 }
  0x30   : > { %p1952_p4 = scmp.ne.s32.totalorder (!%p1951_p1), %s1949_s18, 0 }
  0x31   : > { %272 = sbr.rel (%p1951_p1) target bundleno = 743 (0x2e7), region = 48 }
  0x38   : > { %1593 = dma.done.wait (%p1952_p4), [#allocation4], 8192  }
  0x39   : > { %1595 = vsyncadd (%p1952_p4), [#allocation4], 4294959104  ;;  %s304_s11 = sand.u32 1, %s1606_s25   ;;  %p307_p3 = scmp.lt.s32.totalorder %s1618_s28, 1 }
  0x3a   : > { %s1794_s22 = sshll.u32 %s304_s11, 3  ;;  %p309_p9 = scmp.lt.s32.totalorder %s1614_s27, 1 }
  0x3b   : > { %s308_s16 = scalar_select %p307_p3, %s1618_s28, 1 }
  0x3c   : > { %s310_s21 = scalar_select %p309_p9, %s1614_s27, 1 }
  0x3d   : > { %s1307_s17 = sshll.u32 %s308_s16, 1  ;;  %s306_s10 = scalar_lea.vmem [#allocation6], %s1794_s22 }
  0x3e   : > { %s312_s13 = sadd.s32 %s1307_s17, %s310_s21  ;;  %p1309_p10 = scmp.ne.s32.totalorder %s1614_s27, 0 }
  0x3f   : > { %s1308_s20 = sshll.u32 %s312_s13, 3  ;;  %v1635_v0 = vmov (!%p1309_p10), -inf  }
  0x40   : > { %s314_s23 = scalar_lea.vmem %s1931_s0, %s1308_s20  ;;  %319 = sbr.rel (%p1309_p10) target bundleno = 71 (0x47), region = 56  ;;  %320 = vst [vmem:[#allocation2] sm:$0xff] (!%p1309_p10), %v1635_v0  ;;  %321 = vst [vmem:[#allocation2 + $0x8] sm:$0xff] (!%p1309_p10), %v1635_v0 }
  0x41   : > { %322 = vst [vmem:[#allocation2 + $0x10] sm:$0xff] (!%p1309_p10), %v1635_v0  ;;  %323 = vst [vmem:[#allocation2 + $0x18] sm:$0xff] (!%p1309_p10), %v1635_v0 }
  0x42   : > { %324 = vst [vmem:[#allocation2 + $0x20] sm:$0xff] (!%p1309_p10), %v1635_v0  ;;  %325 = vst [vmem:[#allocation2 + $0x28] sm:$0xff] (!%p1309_p10), %v1635_v0 }
  0x43   : > { %326 = vst [vmem:[#allocation2 + $0x30] sm:$0xff] (!%p1309_p10), %v1635_v0  ;;  %327 = vst [vmem:[#allocation2 + $0x38] sm:$0xff] (!%p1309_p10), %v1635_v0 }
  0x47 PF: > { %v328_v1 = vld [vmem:[%s314_s23] sm:$0xff]  ;;  %v1636_v2 = vmov 0   ;;  %v1637_v3 = vmov 2   ;;  %v1638_v5 = vmov 0.0   ;;  %v1639_v6 = vmov 1   ;;  %v1501_v7 = vld [vmem:[%s1934_s3 + $0x8] sm:$0xff]  }
  0x48   : > { %1496 = vset.pattern.permute.xlu0 %v1636_v2  ;;  %1498 = vset.pattern.permute.xlu1 %v1637_v3  ;;  %v1500_v4 = vld [vmem:[%s1934_s3] sm:$0xff]   ;;  %v1502_v8 = vld [vmem:[%s1934_s3 + $0x10] sm:$0xff]   ;;  %v1503_v9 = vld [vmem:[%s1934_s3 + $0x18] sm:$0xff]   ;;  %vm1640_vm0 = vmmov 0   ;;  %v335_v42 = vlaneseq  ;;  %vm409_vm1 = vcmask 523264   ;;  %p1381_p13 = scmp.ne.s32.totalorder %s1614_s27, 1 }
  0x49   : > { %332 = vperm.xlu0 %1496, %v328_v1   ;;  %351 = vperm.xlu1 %1498, %v328_v1   ;;  %v455_v10 = vld [vmem:[#allocation3] sm:$0xff]  ;;  %v1818_v12 = vld [vmem:[#allocation3 + $0x8] sm:$0xff] }
  0x4a   : > { %1393 = vmatprep.subr.bf16.mxu0 %v1638_v5  ;;  %913 = vmatprep.mubr.bf16.mxu1 %v1636_v2  ;;  %v459_v11 = vld [vmem:[#allocation3 + $0x20] sm:$0xff]  ;;  %v1820_v14 = vld [vmem:[#allocation3 + $0x28] sm:$0xff]  ;;  %v1826_v43 = vshrl.u32 %v335_v42, 7 }
  0x4b   : > { %1394 = vmatpush3.bf16.msra.mxu0 %v1500_v4  ;;  %1401 = vmatprep.mubr.msk.bf16.mxu0 %vm1640_vm0, %v1638_v5  ;;  %v1318_v13 = vcombine.high %v455_v10, %v459_v11  ;;  %v1317_v15 = vcombine.low %v455_v10, %v459_v11  ;;  %v463_v16 = vld [vmem:[#allocation3 + $0x40] sm:$0xff]  ;;  %v1319_v18 = vcombine.low %v1818_v12, %v1820_v14  ;;  %v464_v61 = vld [vmem:[#allocation3 + $0x48] sm:$0xff] }
  0x4c   : > { %1395 = vmatprep.subr.bf16.mxu0 %v1638_v5  ;;  %v467_v17 = vld [vmem:[#allocation3 + $0x60] sm:$0xff]  ;;  %v1320_v19 = vcombine.high %v1818_v12, %v1820_v14  ;;  %v337_v44 = vsub.s32 0, %v1826_v43  ;;  %v346_v45 = vsub.s32 1, %v1826_v43  ;;  %v356_v46 = vsub.s32 2, %v1826_v43  ;;  %v468_v62 = vld [vmem:[#allocation3 + $0x68] sm:$0xff] }
  0x4d   : > { %1497 = vset.pattern.permute.xlu0 %v1639_v6  ;;  %v1326_v20 = vcombine.high %v463_v16, %v467_v17  ;;  %881 = vmatprep.subr.bf16.mxu1 %v1318_v13  ;;  %v1325_v21 = vcombine.low %v463_v16, %v467_v17  ;;  %v471_v22 = vld [vmem:[#allocation3 + $0x80] sm:$0xff]  ;;  %v476_v4 = vld [vmem:[#allocation3 + $0xa8] sm:$0xff] }
  0x4e   : > { %341 = vperm.xlu0 %1497, %v328_v1   ;;  %882 = vmatpush1.bf16.msra.mxu1 %v1317_v15  ;;  %v475_v23 = vld [vmem:[#allocation3 + $0xa0] sm:$0xff]  ;;  %v1328_v1 = vcombine.high %v464_v61, %v468_v62  ;;  %v488_v11 = vld [vmem:[#allocation3 + $0x108] sm:$0xff] }
  0x4f   : > { %1396 = vmatpush3.bf16.msra.mxu0 %v1501_v7  ;;  %883 = vmatprep.subr.bf16.mxu1 %v1326_v20  ;;  %v1334_v24 = vcombine.high %v471_v22, %v475_v23  ;;  %v1333_v25 = vcombine.low %v471_v22, %v475_v23  ;;  %v479_v26 = vld [vmem:[#allocation3 + $0xc0] sm:$0xff]  ;;  %v480_v7 = vld [vmem:[#allocation3 + $0xc8] sm:$0xff] }
  0x50   : > { %1397 = vmatprep.subr.bf16.mxu0 %v1638_v5  ;;  %v483_v27 = vld [vmem:[#allocation3 + $0xe0] sm:$0xff]  ;;  %v492_v13 = vld [vmem:[#allocation3 + $0x128] sm:$0xff] }
  0x51   : > { %v1342_v28 = vcombine.high %v479_v26, %v483_v27  ;;  %v1341_v29 = vcombine.low %v479_v26, %v483_v27  ;;  %v487_v30 = vld [vmem:[#allocation3 + $0x100] sm:$0xff]  ;;  %v1352_v16 = vcombine.high %v488_v11, %v492_v13  ;;  %v496_v17 = vld [vmem:[#allocation3 + $0x148] sm:$0xff]  ;;  %v1351_v14 = vcombine.low %v488_v11, %v492_v13  ;;  %v489_v11 = vld [vmem:[#allocation3 + $0x110] sm:$0xff] }
  0x52   : > { %1499 = vset.pattern.permute.xlu0 %v1637_v3  ;;  %884 = vmatpush1.bf16.msra.mxu1 %v1325_v21  ;;  %v491_v31 = vld [vmem:[#allocation3 + $0x120] sm:$0xff]  ;;  %v472_v3 = vld [vmem:[#allocation3 + $0x88] sm:$0xff]  ;;  %v493_v13 = vld [vmem:[#allocation3 + $0x130] sm:$0xff] }
  0x53   : > { %1398 = vmatpush3.bf16.msra.mxu0 %v1502_v8  ;;  %885 = vmatprep.subr.bf16.mxu1 %v1334_v24  ;;  %v1350_v32 = vcombine.high %v487_v30, %v491_v31  ;;  %v1349_v33 = vcombine.low %v487_v30, %v491_v31  ;;  %v495_v34 = vld [vmem:[#allocation3 + $0x140] sm:$0xff]  ;;  %v1336_v6 = vcombine.high %v472_v3, %v476_v4  ;;  %v484_v8 = vld [vmem:[#allocation3 + $0xe8] sm:$0xff] }
  0x54   : > { %1399 = vmatprep.subr.bf16.mxu0 %v1638_v5  ;;  %v499_v35 = vld [vmem:[#allocation3 + $0x160] sm:$0xff]  ;;  %v1327_v5 = vcombine.low %v464_v61, %v468_v62  ;;  %v1344_v10 = vcombine.high %v480_v7, %v484_v8  ;;  %v1343_v15 = vcombine.low %v480_v7, %v484_v8  ;;  %v500_v12 = vld [vmem:[#allocation3 + $0x168] sm:$0xff]  ;;  %v478_v61 = vld [vmem:[#allocation3 + $0xb8] sm:$0xff] }
  0x55   : > { %v1358_v36 = vcombine.high %v495_v34, %v499_v35  ;;  %v1357_v37 = vcombine.low %v495_v34, %v499_v35  ;;  %v503_v38 = vld [vmem:[#allocation3 + $0x180] sm:$0xff]  ;;  %v508_v20 = vld [vmem:[#allocation3 + $0x1a8] sm:$0xff]  ;;  %v1359_v21 = vcombine.low %v496_v17, %v500_v12  ;;  %v458_v34 = vld [vmem:[#allocation3 + $0x18] sm:$0xff] }
  0x56   : > { %886 = vmatpush1.bf16.msra.mxu1 %v1333_v25  ;;  %v507_v39 = vld [vmem:[#allocation3 + $0x1a0] sm:$0xff]  ;;  %v512_v26 = vld [vmem:[#allocation3 + $0x1c8] sm:$0xff] }
  0x57   : > { %1400 = vmatpush3.bf16.msra.mxu0 %v1503_v9  ;;  %887 = vmatprep.subr.bf16.mxu1 %v1342_v28  ;;  %v1366_v40 = vcombine.high %v503_v38, %v507_v39  ;;  %v1365_v41 = vcombine.low %v503_v38, %v507_v39  ;;  %v329_v47 = vld [vmem:[%s1932_s1] sm:$0x7]  ;;  %v1335_v9 = vcombine.low %v472_v3, %v476_v4  ;;  %v516_v28 = vld [vmem:[#allocation3 + $0x1e8] sm:$0xff]  ;;  %v481_v3 = vld [vmem:[#allocation3 + $0xd0] sm:$0xff] }
  0x58   : > { %922 = vmatprep.subr.bf16.mxu0 %v1320_v19  ;;  %v338_v49 = vrot.slane %v329_v47, %v337_v44  ;;  %v347_v50 = vrot.slane %v329_v47, %v346_v45  ;;  %v357_v51 = vrot.slane %v329_v47, %v356_v46  ;;  %v1310_v58 = vld [vmem:[%s1933_s2] ss:$0 sm:$0xff]  ;;  %v504_v19 = vld [vmem:[#allocation3 + $0x188] sm:$0xff]  ;;  %v1376_v30 = vcombine.high %v512_v26, %v516_v28  ;;  %v485_v4 = vld [vmem:[#allocation3 + $0xf0] sm:$0xff] }
  0x59   : > { %v1368_v22 = vcombine.high %v504_v19, %v508_v20  ;;  %v1367_v23 = vcombine.low %v504_v19, %v508_v20  ;;  %v511_v24 = vld [vmem:[#allocation3 + $0x1c0] sm:$0xff]  ;;  %v501_v19 = vld [vmem:[#allocation3 + $0x170] sm:$0xff]  ;;  %v498_v20 = vld [vmem:[#allocation3 + $0x158] sm:$0xff] }
  0x5a   : > { %888 = vmatpush1.bf16.msra.mxu1 %v1341_v29  ;;  %v515_v25 = vld [vmem:[#allocation3 + $0x1e0] sm:$0xff]  ;;  %v1375_v29 = vcombine.low %v512_v26, %v516_v28  ;;  %v505_v26 = vld [vmem:[#allocation3 + $0x190] sm:$0xff]  ;;  %v506_v28 = vld [vmem:[#allocation3 + $0x198] sm:$0xff] }
  0x5b   : > { %889 = vmatprep.subr.bf16.mxu1 %v1350_v32  ;;  %v1374_v27 = vcombine.high %v511_v24, %v515_v25  ;;  %v1373_v31 = vcombine.low %v511_v24, %v515_v25  ;;  %v457_v32 = vld [vmem:[#allocation3 + $0x10] sm:$0xff] }
  0x5e   : > { %890 = vmatpush1.bf16.msra.mxu1 %v1349_v33  ;;  %v461_v33 = vld [vmem:[#allocation3 + $0x30] sm:$0xff] }
  0x5f   : > { %891 = vmatprep.subr.bf16.mxu1 %v1358_v36  ;;  %v1322_v35 = vcombine.high %v457_v32, %v461_v33  ;;  %v462_v36 = vld [vmem:[#allocation3 + $0x38] sm:$0xff] }
  0x60   : > { %v1323_v38 = vcombine.low %v458_v34, %v462_v36  ;;  %v1324_v39 = vcombine.high %v458_v34, %v462_v36  ;;  %v513_v34 = vld [vmem:[#allocation3 + $0x1d0] sm:$0xff]  ;;  %v514_v36 = vld [vmem:[#allocation3 + $0x1d8] sm:$0xff] }
  0x62   : > { %892 = vmatpush1.bf16.msra.mxu1 %v1357_v37  ;;  %v1321_v37 = vcombine.low %v457_v32, %v461_v33 }
  0x63   : > { %893 = vmatprep.subr.bf16.mxu1 %v1366_v40  ;;  %v1311_v40 = vld [vmem:[%s1935_s4] ss:$0 sm:$0xff] }
  0x66   : > { %894 = vmatpush1.bf16.msra.mxu1 %v1365_v41 }
  0x67   : > { %895 = vmatprep.subr.bf16.mxu1 %v1374_v27  ;;  %v509_v27 = vld [vmem:[#allocation3 + $0x1b0] sm:$0xff] }
  0x68   : > { %v1370_v32 = vcombine.high %v505_v26, %v509_v27 }
  0x6a   : > { %896 = vmatpush1.bf16.msra.mxu1 %v1373_v31 }
  0x6b   : > { %963 = vmatprep.subr.bf16.mxu1 %v1322_v35  ;;  %v517_v35 = vld [vmem:[#allocation3 + $0x1f0] sm:$0xff] }
  0xc8   : > { %v333_v48 = vpop.permute.xlu0 %332  ;;  %v352_v52 = vpop.permute.xlu1 %351 }
  0xc9   : > { %v339_v54 = vmul.f32 %v338_v49, %v333_v48  ;;  %v358_v56 = vmul.f32 %v357_v51, %v352_v52  ;;  %v465_v48 = vld [vmem:[#allocation3 + $0x50] sm:$0xff]  ;;  %v466_v51 = vld [vmem:[#allocation3 + $0x58] sm:$0xff] }
  0xca   : > { %v470_v52 = vld [vmem:[#allocation3 + $0x78] sm:$0xff] }
  0xcd   : > { %v342_v53 = vpop.permute.xlu0 %341 }
  0xce   : > { %v348_v55 = vmul.f32 %v347_v50, %v342_v53  ;;  %v469_v50 = vld [vmem:[#allocation3 + $0x70] sm:$0xff] }
  0xcf   : > { %v1329_v62 = vcombine.low %v465_v48, %v469_v50 }
  0xd0   : > { %v349_v57 = vadd.f32 %v348_v55, %v339_v54 }
  0xd2   : > { %v359_v59 = vadd.f32 %v358_v56, %v349_v57  ;;  %v1330_v56 = vcombine.high %v465_v48, %v469_v50  ;;  %v1332_v57 = vcombine.high %v466_v51, %v470_v52  ;;  %v519_v48 = vld [vmem:[%s1937_s6] sm:$0xff] }
  0xd3   : > { %v524_v50 = vrot.slane %v519_v48, %v337_v44 }
  0xd4   : > { %v367_v60 = vadd.f32 %v1310_v58, %v359_v59  ;;  %v473_v58 = vld [vmem:[#allocation3 + $0x90] sm:$0xff] }
  0xd5   : > { %v477_v59 = vld [vmem:[#allocation3 + $0xb0] sm:$0xff] }
  0xd6   : > { %v368_v63 = vmax.f32 %v367_v60, 0.0  ;;  %v474_v60 = vld [vmem:[#allocation3 + $0x98] sm:$0xff]  ;;  %v1337_v7 = vcombine.low %v473_v58, %v477_v59 }
  0xd7   : > { %v1339_v8 = vcombine.low %v474_v60, %v478_v61 }
  0xd8   : > { %v369_v0 = vpack.c.bf16 %v368_v63, %v368_v63  ;;  %v1331_v63 = vcombine.low %v466_v51, %v470_v52  ;;  %v532_v51 = vrot.slane %v519_v48, %v356_v46  ;;  %v528_v52 = vrot.slane %v519_v48, %v346_v45  ;;  %v1056_v46 = vld [vmem:[#allocation2 + $0x18] sm:$0xff] }
  0xda   : > { %1402 = vmatmul.mubr.msk.bf16.vlgmr.msra.gmra.mrb[0].mxu0 %vm409_vm1, %v369_v0  ;;  %v1338_v0 = vcombine.high %v473_v58, %v477_v59 }
  0xdb   : > { %923 = vmatpush1.bf16.msra.mxu0 %v1319_v18  ;;  %954 = vmatprep.mubr.bf16.mxu0 %v1636_v2  ;;  %v1360_v18 = vcombine.high %v496_v17, %v500_v12  ;;  %v1345_v17 = vcombine.low %v481_v3, %v485_v4 }
  0xdc   : > { %924 = vmatprep.subr.bf16.mxu0 %v1328_v1  ;;  %v1340_v1 = vcombine.high %v474_v60, %v478_v61  ;;  %v1053_v60 = vld [vmem:[#allocation2] sm:$0xff]  ;;  %v1055_v61 = vld [vmem:[#allocation2 + $0x10] sm:$0xff] }
  0xdf   : > { %925 = vmatpush1.bf16.msra.mxu0 %v1327_v5  ;;  %v482_v5 = vld [vmem:[#allocation3 + $0xd8] sm:$0xff] }
  0xe0   : > { %926 = vmatprep.subr.bf16.mxu0 %v1336_v6  ;;  %v486_v6 = vld [vmem:[#allocation3 + $0xf8] sm:$0xff] }
  0xe1   : > { %v1347_v12 = vcombine.low %v482_v5, %v486_v6 }
  0xe3   : > { %927 = vmatpush1.bf16.msra.mxu0 %v1335_v9  ;;  %v1346_v9 = vcombine.high %v481_v3, %v485_v4  ;;  %v1054_v4 = vld [vmem:[#allocation2 + $0x8] sm:$0xff] }
  0xe4   : > { %928 = vmatprep.subr.bf16.mxu0 %v1344_v10  ;;  %v1348_v10 = vcombine.high %v482_v5, %v486_v6 }
  0xe7   : > { %929 = vmatpush1.bf16.msra.mxu0 %v1343_v15  ;;  %v490_v15 = vld [vmem:[#allocation3 + $0x118] sm:$0xff] }
  0xe8   : > { %930 = vmatprep.subr.bf16.mxu0 %v1352_v16  ;;  %v494_v16 = vld [vmem:[#allocation3 + $0x138] sm:$0xff] }
  0xeb   : > { %931 = vmatpush1.bf16.msra.mxu0 %v1351_v14  ;;  %v1354_v14 = vcombine.high %v489_v11, %v493_v13 }
  0xec   : > { %932 = vmatprep.subr.bf16.mxu0 %v1360_v18  ;;  %v497_v18 = vld [vmem:[#allocation3 + $0x150] sm:$0xff] }
  0xed   : > { %v1362_v24 = vcombine.high %v497_v18, %v501_v19 }
  0xef   : > { %933 = vmatpush1.bf16.msra.mxu0 %v1359_v21  ;;  %v502_v21 = vld [vmem:[#allocation3 + $0x178] sm:$0xff] }
  0xf0   : > { %934 = vmatprep.subr.bf16.mxu0 %v1368_v22  ;;  %v1353_v22 = vcombine.low %v489_v11, %v493_v13  ;;  %v1364_v25 = vcombine.high %v498_v20, %v502_v21  ;;  %v1363_v31 = vcombine.low %v498_v20, %v502_v21  ;;  %v539_v13 = vsub.s32 4, %v1826_v43 }
  0xf3   : > { %935 = vmatpush1.bf16.msra.mxu0 %v1367_v23  ;;  %v1355_v23 = vcombine.low %v490_v15, %v494_v16 }
  0xf4   : > { %936 = vmatprep.subr.bf16.mxu0 %v1376_v30  ;;  %v1361_v30 = vcombine.low %v497_v18, %v501_v19 }
  0xf7   : > { %937 = vmatpush1.bf16.msra.mxu0 %v1375_v29  ;;  %v510_v29 = vld [vmem:[#allocation3 + $0x1b8] sm:$0xff] }
  0xf8   : > { %1004 = vmatprep.subr.bf16.mxu0 %v1324_v39  ;;  %v1372_v33 = vcombine.high %v506_v28, %v510_v29  ;;  %v1371_v39 = vcombine.low %v506_v28, %v510_v29 }
 0x1ad   : > { %v447_v41 = vpop.f32.mrb[0].mxu0 }
 0x1ae   : > { %v448_v42 = vadd.f32 %v1311_v40, %v447_v41  ;;  %v1403_v47 = vpop.f32.mrb[1].mxu0  ;;  %v1378_v40 = vcombine.high %v513_v34, %v517_v35 }
 0x1af   : > { %v450_v49 = vpop.f32.mrb[2].mxu0 }
 0x1b0   : > { %v453_v53 = vmax.f32 %v448_v42, 0.0  ;;  %v1404_v54 = vpop.f32.mrb[3].mxu0  ;;  %v1377_v42 = vcombine.low %v513_v34, %v517_v35  ;;  %v535_v49 = vsub.s32 3, %v1826_v43  ;;  %v1060_v34 = vld [vmem:[#allocation2 + $0x38] sm:$0xff] }
 0x1b2   : > { %v1850_v55 = vpack.c.bf16 %v453_v53, %v453_v53  ;;  %v536_v53 = vrot.slane %v519_v48, %v535_v49 }
 0x1b4   : > { %914 = vmatmul.mubr.bf16.vlgmr.msra.gmra.mrb[0].mxu1 %v1850_v55  ;;  %955 = vmatmul.mubr.bf16.vlgmr.msra.gmra.mrb[4].mxu0 %v1850_v55 }
 0x1b5   : > { %964 = vmatpush1.bf16.msra.mxu1 %v1321_v37  ;;  %1005 = vmatpush1.bf16.msra.mxu0 %v1323_v38  ;;  %v518_v37 = vld [vmem:[#allocation3 + $0x1f8] sm:$0xff]  ;;  %v1369_v38 = vcombine.low %v505_v26, %v509_v27  ;;  %v1059_v26 = vld [vmem:[#allocation2 + $0x30] sm:$0xff] }
 0x1b6   : > { %965 = vmatprep.subr.bf16.mxu1 %v1330_v56  ;;  %1006 = vmatprep.subr.bf16.mxu0 %v1332_v57  ;;  %v1380_v41 = vcombine.high %v514_v36, %v518_v37  ;;  %v1379_v47 = vcombine.low %v514_v36, %v518_v37 }
 0x1b7   : > { %995 = vmatprep.mubr.bf16.mxu1 %v1636_v2  ;;  %1036 = vmatprep.mubr.bf16.mxu0 %v1636_v2  ;;  %v1356_v2 = vcombine.high %v490_v15, %v494_v16  ;;  %v547_v15 = vsub.s32 6, %v1826_v43  ;;  %v543_v16 = vsub.s32 5, %v1826_v43 }
 0x1b9   : > { %966 = vmatpush1.bf16.msra.mxu1 %v1329_v62  ;;  %1007 = vmatpush1.bf16.msra.mxu0 %v1331_v63 }
 0x1ba   : > { %967 = vmatprep.subr.bf16.mxu1 %v1338_v0  ;;  %1008 = vmatprep.subr.bf16.mxu0 %v1340_v1 }
 0x1bd   : > { %968 = vmatpush1.bf16.msra.mxu1 %v1337_v7  ;;  %1009 = vmatpush1.bf16.msra.mxu0 %v1339_v8 }
 0x1be   : > { %969 = vmatprep.subr.bf16.mxu1 %v1346_v9  ;;  %1010 = vmatprep.subr.bf16.mxu0 %v1348_v10 }
 0x1c1   : > { %970 = vmatpush1.bf16.msra.mxu1 %v1345_v17  ;;  %1011 = vmatpush1.bf16.msra.mxu0 %v1347_v12  ;;  %v551_v17 = vsub.s32 7, %v1826_v43  ;;  %v540_v12 = vrot.slane %v519_v48, %v539_v13 }
 0x1c2   : > { %971 = vmatprep.subr.bf16.mxu1 %v1354_v14  ;;  %1012 = vmatprep.subr.bf16.mxu0 %v1356_v2  ;;  %v548_v14 = vrot.slane %v519_v48, %v547_v15  ;;  %v544_v2 = vrot.slane %v519_v48, %v543_v16 }
 0x1c3   : > { %v552_v18 = vrot.slane %v519_v48, %v551_v17 }
 0x1c5   : > { %972 = vmatpush1.bf16.msra.mxu1 %v1353_v22  ;;  %1013 = vmatpush1.bf16.msra.mxu0 %v1355_v23 }
 0x1c6   : > { %973 = vmatprep.subr.bf16.mxu1 %v1362_v24  ;;  %1014 = vmatprep.subr.bf16.mxu0 %v1364_v25  ;;  %v1057_v25 = vld [vmem:[#allocation2 + $0x20] sm:$0xff] }
 0x1c9   : > { %974 = vmatpush1.bf16.msra.mxu1 %v1361_v30  ;;  %1015 = vmatpush1.bf16.msra.mxu0 %v1363_v31 }
 0x1ca   : > { %975 = vmatprep.subr.bf16.mxu1 %v1370_v32  ;;  %1016 = vmatprep.subr.bf16.mxu0 %v1372_v33  ;;  %v1058_v33 = vld [vmem:[#allocation2 + $0x28] sm:$0xff] }
 0x1cd   : > { %976 = vmatpush1.bf16.msra.mxu1 %v1369_v38  ;;  %1017 = vmatpush1.bf16.msra.mxu0 %v1371_v39 }
 0x1ce   : > { %977 = vmatprep.subr.bf16.mxu1 %v1378_v40  ;;  %1018 = vmatprep.subr.bf16.mxu0 %v1380_v41 }
 0x1d1   : > { %978 = vmatpush1.bf16.msra.mxu1 %v1377_v42  ;;  %1019 = vmatpush1.bf16.msra.mxu0 %v1379_v47 }
 0x1d4   : > { %996 = vmatmul.mubr.bf16.vlgmr.msra.gmra.mrb[4].mxu1 %v1850_v55  ;;  %1037 = vmatmul.mubr.bf16.vlgmr.msra.gmra.mrb[8].mxu0 %v1850_v55 }
 0x287   : > { %v915_v54 = vpop.f32.mrb[0].mxu1  ;;  %v956_v56 = vpop.f32.mrb[4].mxu0 }
 0x288   : > { %v916_v57 = vadd.f32 %v915_v54, %v524_v50  ;;  %v957_v55 = vadd.f32 %v956_v56, %v532_v51  ;;  %v917_v58 = vpop.f32.mrb[1].mxu1  ;;  %v958_v59 = vpop.f32.mrb[5].mxu0 }
 0x289   : > { %v918_v62 = vadd.f32 %v917_v58, %v528_v52  ;;  %v959_v63 = vadd.f32 %v958_v59, %v536_v53  ;;  %v919_v0 = vpop.f32.mrb[2].mxu1  ;;  %v960_v1 = vpop.f32.mrb[6].mxu0 }
 0x28a   : > { %v1045_v44 = vmax.f32 %v916_v57, 0.0  ;;  %v1047_v3 = vmax.f32 %v957_v55, 0.0  ;;  %v920_v5 = vpop.f32.mrb[3].mxu1  ;;  %v961_v6 = vpop.f32.mrb[7].mxu0 }
 0x28b   : > { %v1046_v45 = vmax.f32 %v918_v62, 0.0  ;;  %v1048_v7 = vmax.f32 %v959_v63, 0.0 }
 0x28c   : > { %v1061_v8 = vmax.f32 %v1053_v60, %v1045_v44  ;;  %v1063_v9 = vmax.f32 %v1055_v61, %v1047_v3  ;;  %v1641_v61 = vmov (!%p1381_p13), 1966171168  }
 0x28d   : > { %v1062_v10 = vmax.f32 %v1054_v4, %v1046_v45  ;;  %v1064_v11 = vmax.f32 %v1056_v46, %v1048_v7  ;;  %v1150_v62 = vunpack.c.l.s4 (!%p1381_p13), %v1641_v61 }
 0x28e   : > { %1069 = vst [vmem:[#allocation2] sm:$0xff] %v1061_v8  ;;  %1071 = vst [vmem:[#allocation2 + $0x10] sm:$0xff] %v1063_v9 }
 0x28f   : > { %1070 = vst [vmem:[#allocation2 + $0x8] sm:$0xff] %v1062_v10  ;;  %1072 = vst [vmem:[#allocation2 + $0x18] sm:$0xff] %v1064_v11 }
 0x295   : > { %v1081_v47 = vld [vmem:[#allocation2] sm:$0xff] (!%p1381_p13)  ;;  %v1083_v49 = vld [vmem:[#allocation2 + $0x10] sm:$0xff] (!%p1381_p13) }
 0x296   : > { %v1082_v48 = vld [vmem:[#allocation2 + $0x8] sm:$0xff] (!%p1381_p13)  ;;  %v1084_v50 = vld [vmem:[#allocation2 + $0x18] sm:$0xff] (!%p1381_p13)  ;;  %v1089_v53 = vrot.slane (!%p1381_p13), %v1081_v47, 4  ;;  %v1101_v56 = vrot.slane (!%p1381_p13), %v1083_v49, 4 }
 0x297   : > { %v1095_v54 = vrot.slane (!%p1381_p13), %v1082_v48, 4  ;;  %v1107_v58 = vrot.slane (!%p1381_p13), %v1084_v50, 4 }
 0x298   : > { %v1090_v63 = vmax.f32 (!%p1381_p13), %v1081_v47, %v1089_v53  ;;  %v1102_v1 = vmax.f32 (!%p1381_p13), %v1083_v49, %v1101_v56 }
 0x299   : > { %v1096_v0 = vmax.f32 (!%p1381_p13), %v1082_v48, %v1095_v54  ;;  %v1108_v3 = vmax.f32 (!%p1381_p13), %v1084_v50, %v1107_v58 }
 0x29a   : > { %v1091_v6 = vrot.slane (!%p1381_p13), %v1090_v63, 2  ;;  %v1103_v7 = vrot.slane (!%p1381_p13), %v1102_v1, 2 }
 0x29b   : > { %v1097_v45 = vrot.slane (!%p1381_p13), %v1096_v0, 2  ;;  %v1109_v9 = vrot.slane (!%p1381_p13), %v1108_v3, 2 }
 0x29c   : > { %v1092_v15 = vmax.f32 (!%p1381_p13), %v1090_v63, %v1091_v6  ;;  %v1104_v17 = vmax.f32 (!%p1381_p13), %v1102_v1, %v1103_v7 }
 0x29d   : > { %v1098_v16 = vmax.f32 (!%p1381_p13), %v1096_v0, %v1097_v45 }
 0x2a7   : > { %v997_v19 = vpop.f32.mrb[4].mxu1  ;;  %v1038_v20 = vpop.f32.mrb[8].mxu0 }
 0x2a8   : > { %v998_v21 = vadd.f32 %v997_v19, %v540_v12  ;;  %v1039_v22 = vadd.f32 %v1038_v20, %v548_v14  ;;  %v999_v23 = vpop.f32.mrb[5].mxu1  ;;  %v1040_v24 = vpop.f32.mrb[9].mxu0  ;;  %v1110_v14 = vmax.f32 (!%p1381_p13), %v1108_v3, %v1109_v9  ;;  %v1093_v20 = vrot.slane (!%p1381_p13), %v1092_v15, 1 }
 0x2a9   : > { %v1000_v27 = vadd.f32 %v999_v23, %v544_v2  ;;  %v1041_v28 = vadd.f32 %v1040_v24, %v552_v18  ;;  %v1001_v29 = vpop.f32.mrb[6].mxu1  ;;  %v1042_v30 = vpop.f32.mrb[10].mxu0  ;;  %1080 = sbr.rel (%p1381_p13) target bundleno = 718 (0x2ce), region = 60 }
 0x2aa   : > { %v1049_v31 = vmax.f32 %v998_v21, 0.0  ;;  %v1051_v32 = vmax.f32 %v1039_v22, 0.0  ;;  %v1002_v35 = vpop.f32.mrb[7].mxu1  ;;  %v1043_v36 = vpop.f32.mrb[11].mxu0  ;;  %v1099_v21 = vrot.slane (!%p1381_p13), %v1098_v16, 1  ;;  %v1105_v22 = vrot.slane (!%p1381_p13), %v1104_v17, 1 }
 0x2ab   : > { %v1050_v37 = vmax.f32 %v1000_v27, 0.0  ;;  %v1052_v38 = vmax.f32 %v1041_v28, 0.0  ;;  %v1111_v24 = vrot.slane (!%p1381_p13), %v1110_v14, 1  ;;  %v1094_v28 = vmax.f32 (!%p1381_p13), %v1092_v15, %v1093_v20 }
 0x2ac   : > { %v1065_v39 = vmax.f32 %v1057_v25, %v1049_v31  ;;  %v1067_v40 = vmax.f32 %v1059_v26, %v1051_v32  ;;  %v1100_v29 = vmax.f32 (!%p1381_p13), %v1098_v16, %v1099_v21  ;;  %v1106_v30 = vmax.f32 (!%p1381_p13), %v1104_v17, %v1105_v22 }
 0x2ad   : > { %v1066_v41 = vmax.f32 %v1058_v33, %v1050_v37  ;;  %v1068_v42 = vmax.f32 %v1060_v34, %v1052_v38  ;;  %v1112_v32 = vmax.f32 (!%p1381_p13), %v1110_v14, %v1111_v24  ;;  %v1151_v38 = vunpack.c.0.s8 (!%p1381_p13), %v1150_v62 }
 0x2ae   : > { %1073 = vst [vmem:[#allocation2 + $0x20] sm:$0xff] %v1065_v39  ;;  %1075 = vst [vmem:[#allocation2 + $0x30] sm:$0xff] %v1067_v40  ;;  %v1145_v37 = vcombine.low (!%p1381_p13), %v1094_v28, %v1100_v29 }
 0x2af   : > { %1074 = vst [vmem:[#allocation2 + $0x28] sm:$0xff] %v1066_v41  ;;  %1076 = vst [vmem:[#allocation2 + $0x38] sm:$0xff] %v1068_v42  ;;  %v1146_v40 = vcombine.low (!%p1381_p13), %v1106_v30, %v1112_v32  ;;  %v1154_v42 = vsub.s32 (!%p1381_p13), %v1151_v38, %v1826_v43 }
 0x2b1   : > { %v1155_v48 = vrot.slane %v1145_v37, %v1154_v42  ;;  %v1162_v49 = vrot.slane %v1146_v40, %v1154_v42 }
 0x2b5   : > { %v1085_v51 = vld [vmem:[#allocation2 + $0x20] sm:$0xff]  ;;  %v1087_v57 = vld [vmem:[#allocation2 + $0x30] sm:$0xff] }
 0x2b6   : > { %v1086_v52 = vld [vmem:[#allocation2 + $0x28] sm:$0xff]  ;;  %v1088_v55 = vld [vmem:[#allocation2 + $0x38] sm:$0xff]  ;;  %v1113_v59 = vrot.slane %v1085_v51, 4  ;;  %v1125_v44 = vrot.slane %v1087_v57, 4 }
 0x2b7   : > { %v1119_v60 = vrot.slane %v1086_v52, 4  ;;  %v1131_v5 = vrot.slane %v1088_v55, 4 }
 0x2b8   : > { %v1114_v4 = vmax.f32 %v1085_v51, %v1113_v59  ;;  %v1126_v8 = vmax.f32 %v1087_v57, %v1125_v44 }
 0x2b9   : > { %v1120_v46 = vmax.f32 %v1086_v52, %v1119_v60  ;;  %v1132_v13 = vmax.f32 %v1088_v55, %v1131_v5  ;;  %v1177_v52 = vcombine.low %v1155_v48, %v1162_v49 }
 0x2ba   : > { %v1115_v10 = vrot.slane %v1114_v4, 2  ;;  %v1127_v12 = vrot.slane %v1126_v8, 2 }
 0x2bb   : > { %v1121_v11 = vrot.slane %v1120_v46, 2  ;;  %v1133_v19 = vrot.slane %v1132_v13, 2  ;;  %v1185_v54 = vrot.slane %v1177_v52, %v1154_v42 }
 0x2bc   : > { %v1116_v2 = vmax.f32 %v1114_v4, %v1115_v10  ;;  %v1128_v23 = vmax.f32 %v1126_v8, %v1127_v12 }
 0x2bd   : > { %v1122_v18 = vmax.f32 %v1120_v46, %v1121_v11  ;;  %v1134_v27 = vmax.f32 %v1132_v13, %v1133_v19 }
 0x2be   : > { %v1117_v25 = vrot.slane %v1116_v2, 1  ;;  %v1129_v31 = vrot.slane %v1128_v23, 1 }
 0x2bf   : > { %v1123_v26 = vrot.slane %v1122_v18, 1  ;;  %v1135_v35 = vrot.slane %v1134_v27, 1 }
 0x2c0   : > { %v1118_v33 = vmax.f32 %v1116_v2, %v1117_v25  ;;  %v1130_v36 = vmax.f32 %v1128_v23, %v1129_v31 }
 0x2c1   : > { %v1124_v34 = vmax.f32 %v1122_v18, %v1123_v26  ;;  %v1136_v39 = vmax.f32 %v1134_v27, %v1135_v35 }
 0x2c3   : > { %v1147_v41 = vcombine.low %v1118_v33, %v1124_v34  ;;  %v1148_v47 = vcombine.low %v1130_v36, %v1136_v39 }
 0x2c5   : > { %v1169_v50 = vrot.slane %v1147_v41, %v1154_v42  ;;  %v1176_v51 = vrot.slane %v1148_v47, %v1154_v42 }
 0x2c7   : > { %v1178_v53 = vcombine.low %v1169_v50, %v1176_v51 }
 0x2c9   : > { %v1192_v56 = vrot.slane %v1178_v53, %v1154_v42 }
 0x2cb   : > { %v1193_v57 = vcombine.low %v1185_v54, %v1192_v56 }
 0x2cd   : > { %1195 = vst [vmem:[%s306_s10] sm:$0xff] %v1193_v57 }
 0x2ce PF: > { %s1387_s27 = sshll.u32 %s1618_s28, 7  ;;  %s1211_s16 = sshll.u32 %s306_s10, 4  ;;  %s1212_s16 = int_to_ptr.vmem [resolvable:$true] %s1211_s16 }
 0x2cf   : > { %s1880_s9 = scalar_lea.hbm %s1938_s7, %s1387_s27  ;;  %s1197_s21 = scalar_lea.sflag [#allocation5], %s304_s11 }
 0x2d0   : > { %s1532_s17 = scalar_lea.vmem %s1212_s16, 128  ;;  %p1953_p2 = scmp.ne.s32.totalorder %s1945_s14, 0 }
 0x2d1   : > { %p1533_p0 = scmp.ne.s32.totalorder %s1212_s16, %s1532_s17  ;;  %s1642_s13 = smov [#allocation6]  }
 0x2d2   : > { %s1536_s20 = sshll.u32 %s1642_s13, 4  ;;  %s1537_s20 = int_to_ptr.vmem [resolvable:$false] %s1536_s20 }
 0x2d3   : > { %p1534_p5 = pnand %p1533_p0, %p1953_p2  ;;  %s1538_s18 = scalar_lea.vmem %s1537_s20, 256 }
 0x2d4   : > { %p1539_p7 = scmp.lt.s32.totalorder %s1212_s16, %s1537_s20  ;;  %p1540_p8 = scmp.lt.s32.totalorder %s1538_s18, %s1532_s17 }
 0x2d5   : > { %p1535_p6 = pneg %p1534_p5 }
 0x2d6   : > { %p1541_p11 = por %p1540_p8, %p1539_p7 }
 0x2d8   : > { %p1542_p12 = pnand %p1541_p11, %p1535_p6 }
 0x2da   : > { %1545 = shalt.err (!%p1542_p12)
}
 0x2db   : > { %s1546_s28 = scalar_lea.hbm %s1880_s9, 128  ;;  %s1550_s10 = scalar_lea.hbm %s1938_s7, 256 }
 0x2dc   : > { %p1547_p1 = scmp.ne.s32.totalorder %s1880_s9, %s1546_s28  ;;  %p1551_p9 = scmp.lt.u32.totalorder %s1880_s9, %s1938_s7 }
 0x2dd   : > { %p1552_p10 = scmp.lt.u32.totalorder %s1550_s10, %s1546_s28  ;;  %p1554_p0 = scmp.lt.u32.totalorder %s1546_s28, %s1880_s9 }
 0x2de   : > { %p1548_p4 = pnand %p1547_p1, %p1953_p2 }
 0x2df   : > { %p1553_p13 = por %p1552_p10, %p1551_p9 }
 0x2e0   : > { %p1549_p3 = pneg %p1548_p4 }
 0x2e1   : > { %p1555_p5 = por %p1554_p0, %p1553_p13 }
 0x2e3   : > { %p1556_p6 = pnand %p1555_p5, %p1549_p3 }
 0x2e5   : > { %1559 = shalt.err (!%p1556_p6)
}
 0x2e6   : > { %1409 = dma.vmem_to_hbm [thread:$0]  (%p1953_p2), %s1212_s16, 128, %s1880_s9, %s1197_s21  }
 0x2e7 PF: > { %p1421_p7 = scmp.ge.s32.totalorder %s1630_s8, 2  ;;  %s1223_s23 = sand.u32 1, %s1602_s24  }
 0x2e8   : > { %p1954_p8 = scmp.ne.s32.totalorder %s1947_s15, 0  ;;  %s1224_s17 = scalar_lea.sflag [#allocation5], %s1223_s23 }
 0x2ea   : > { %p1416_p11 = pnand %p1421_p7, %p1954_p8 }
 0x2ec   : > { %1597 = dma.done.wait (!%p1416_p11), %s1224_s17, 128  }
 0x2ed   : > { %1599 = vsyncadd (!%p1416_p11), %s1224_s17, 4294967168  ;;  %s21_s8 = sadd.s32 1, %s1630_s8   ;;  %s1955_s14 = sld [smem:[#allocation9_spill]] }
 0x2ee   : > { %p18_p12 = scmp.ge.s32.totalorder %s21_s8, 6   ;;  %s1956_s9 = sld [smem:[#allocation10_spill]] }
 0x2ef   : > { %s1957_s24 = smov %s1606_s25  ;;  %s1958_s25 = smov %s1610_s26 }
 0x2f0   : > { %s1959_s26 = smov %s1760_s19  ;;  %s1960_s27 = smov %s1622_s29 }
 0x2f1   : > { %s1961_s28 = smov %s1626_s30  ;;  %20 = sbr.rel (!%p18_p12) target bundleno = 6 (0x6), region = 96 }
 0x2f3   : > { %s1962_s29 = smov %s1955_s14 }
 0x2f4   : > { %s1963_s30 = smov %s1956_s9 }
 0x2f8   :  { %1229 = vsyncpa [#allocation4], 1 }
 0x2f9   :  { %1231 = vsyncpa [#allocation4 + $0x1], 1 }
 0x2fa   :  { %1232 = vsyncpa [#allocation5], 1 }
 0x2fb   :  { %1234 = vsyncpa [#allocation5 + $0x1], 1 }

</bundles_post_ra>
